<compile_context>
chip_gen: v7x
topology: tpu7x:2x2x1
jax: 0.10.0
libtpu: 0.0.40
codegen_flags: <defaults>
</compile_context>

<pallas_src>
import math
import functools

import jax
import jax.numpy as jnp
from jax.experimental import pallas as pl
from jax.experimental.pallas import tpu as pltpu


_DEFAULT_BLOCK_M = 256   # kernel-1 row tile
_DEFAULT_BLOCK_Q = 512   # kernel-2 query tile (larger -> fewer K/V re-reads)
_DEFAULT_BLOCK_K = 256   # kernel-2 key/value tile


def _vmem_limit_bytes():
    """~75% of physical VMEM (v5e/v6e: 128 MiB -> 96; v7x: 64 MiB -> 48)."""
    try:
        return int(pltpu.get_tpu_info().vmem_capacity_bytes * 3 // 4)
    except Exception:  # hardware query unavailable -> smallest safe budget
        return 48 * 1024 * 1024


def _exp_dtype():
    """bf16 exp on v6e/v7x (bf16 EUP path); f32 on v5e / unknown chips."""
    try:
        kind = jax.devices()[0].device_kind.lower()
    except Exception:
        return jnp.float32
    if "v6" in kind or "v7" in kind:
        return jnp.bfloat16
    return jnp.float32


def _pick_tile(n, preferred):
    """Largest tile <= preferred dividing n; prefer multiples of 16 (bf16 sublane
    packing), then 8; else fall back to the full (untiled) extent."""
    if n <= preferred:
        return n
    for align in (16, 8):
        for t in range(preferred, align - 1, -1):
            if n % t == 0 and t % align == 0:
                return t
    # TODO(synk): pad N / use pl.cdiv + key masking instead of requiring an
    # exact divisor for awkward sequence lengths.
    return n


# --------------------------------------------------------------------------- kernels
def _kv_proj_kernel(x_ref, wkv_ref, bkv_ref, k_ref, v_ref, *, emb_size):
    E = emb_size
    x = x_ref[0]                                               # (TM, E) bf16
    # One fused, lane-dense (TM, 2E) MXU pass instead of two E-wide matmuls.
    kv = jnp.dot(x, wkv_ref[...],
                 preferred_element_type=jnp.float32) + bkv_ref[0]
    k_ref[0] = kv[:, :E].astype(k_ref.dtype)
    v_ref[0] = kv[:, E:].astype(v_ref.dtype)


def _flash_attn_kernel(x_ref, k_ref, v_ref, wq_ref, bq_ref, wo_ref, bo_ref,
                       o_ref, q_ref, m_ref, l_ref, acc_ref,
                       *, num_heads, exp_dtype):
    ki = pl.program_id(2)

    @pl.when(ki == 0)
    def _():
        # Fused Q projection (the 1/sqrt(emb_size) scale is already folded into
        # wq/bq at pack time, so no extra VPU multiply here).
        q = jnp.dot(x_ref[0], wq_ref[...],
                    preferred_element_type=jnp.float32) + bq_ref[0]
        q_ref[...] = q.astype(q_ref.dtype)
        m_ref[...] = jnp.full(m_ref.shape, -jnp.inf, m_ref.dtype)
        l_ref[...] = jnp.zeros(l_ref.shape, l_ref.dtype)
        acc_ref[...] = jnp.zeros(acc_ref.shape, acc_ref.dtype)

    q = q_ref[...]                  # (TQ, E) bf16, pre-scaled
    k = k_ref[0]                    # (TK, E) bf16
    v = v_ref[0]                    # (TK, E) bf16
    E = q.shape[-1]
    H = num_heads
    D = E // H

    # Heads live in the '(h d)' lane layout; static per-head column slices avoid
    # the reshape/transpose copies of the naive formulation (and always lower).
    for h in range(H):
        sl = slice(h * D, (h + 1) * D)
        # QK^T for this head: contract both operands on their last (d) axis so
        # no explicit transpose is materialized.  bf16 in, fp32 accumulate.
        s = jax.lax.dot_general(
            q[:, sl], k[:, sl],
            dimension_numbers=(((1,), (1,)), ((), ())),
            preferred_element_type=jnp.float32)                # (TQ, TK) f32
        m_prev = m_ref[h]                                      # (TQ, 1) f32
        m_new = jnp.maximum(m_prev, jnp.max(s, axis=-1, keepdims=True))
        alpha = jnp.exp(m_prev - m_new)
        # bf16 exp on v6e/v7x (2x EUP rate, no extra cast before the PV matmul);
        # f32 on v5e.  Running sum stays f32.
        p = jnp.exp((s - m_new).astype(exp_dtype))             # (TQ, TK)
        l_ref[h] = alpha * l_ref[h] + jnp.sum(p, axis=-1, keepdims=True,
                                              dtype=jnp.float32)
        pv = jnp.dot(p.astype(v.dtype), v[:, sl],
                     preferred_element_type=jnp.float32)       # (TQ, D) f32
        acc_ref[:, sl] = alpha * acc_ref[:, sl] + pv
        m_ref[h] = m_new

    # TODO(synk): att_drop (nn.Dropout) is identity in eval mode; training-mode
    # dropout would use pltpu.prng_seed + pltpu.stateful_bernoulli on `p`.
    # TODO(synk): the optional `mask` argument of the reference forward is not
    # implemented (mask=None path only).

    @pl.when(ki == pl.num_programs(2) - 1)
    def _():
        # Per-head normalization via the EUP approximate reciprocal (frees VALU).
        for h in range(H):
            sl = slice(h * D, (h + 1) * D)
            acc_ref[:, sl] = acc_ref[:, sl] * pl.reciprocal(l_ref[h], approx=True)
        # Fused output projection on the already '(h d)'-contiguous accumulator.
        out = jnp.dot(acc_ref[...].astype(wo_ref.dtype), wo_ref[...],
                      preferred_element_type=jnp.float32) + bo_ref[0]
        o_ref[0] = out.astype(o_ref.dtype)


# --------------------------------------------------------------------------- wrapper
def multi_head_attention(x, params, num_heads, *,
                         block_m=_DEFAULT_BLOCK_M,
                         block_q=_DEFAULT_BLOCK_Q,
                         block_k=_DEFAULT_BLOCK_K):
    """x: (B, N, E) float32.  params: dict of pre-transposed (in, out) weights."""
    B, N, E = x.shape
    assert E % num_heads == 0, "emb_size must be divisible by num_heads"
    H = num_heads
    compute_dtype = jnp.bfloat16   # MXU operand dtype; accumulation stays fp32
    vmem_limit = _vmem_limit_bytes()
    exp_dtype = _exp_dtype()

    # Parameter packing (in a real model this happens once at load time):
    #   * softmax scale folded into Wq/bq.  NOTE: the reference module scales by
    #     sqrt(emb_size), not sqrt(head_dim); kept as-is to match its semantics.
    #   * K/V weights concatenated for one fused projection matmul.
    scale = 1.0 / math.sqrt(E)
    wq = (params["wq"] * scale).astype(compute_dtype)
    bq = (params["bq"] * scale).astype(jnp.float32)
    wkv = jnp.concatenate([params["wk"], params["wv"]], axis=1).astype(compute_dtype)
    bkv = jnp.concatenate([params["bk"], params["bv"]], axis=1).astype(jnp.float32)
    wo = params["wo"].astype(compute_dtype)
    bo = params["bo"].astype(jnp.float32)
    x_bf = x.astype(compute_dtype)
    # TODO(synk): column-tile wkv / wq / wo (extra grid axis) once ~4*E^2 bf16
    # bytes approaches the VMEM budget (E >~ 3K on v7x).

    # ---- kernel 1: fused K/V projection --------------------------------------
    tm = _pick_tile(N, block_m)
    k, v = pl.pallas_call(
        functools.partial(_kv_proj_kernel, emb_size=E),
        out_shape=tuple(jax.ShapeDtypeStruct((B, N, E), compute_dtype)
                        for _ in range(2)),
        grid_spec=pltpu.PrefetchScalarGridSpec(
            num_scalar_prefetch=0,
            grid=(B, N // tm),
            in_specs=[
                pl.BlockSpec((1, tm, E), lambda b, i: (b, i, 0)),   # x
                pl.BlockSpec((E, 2 * E), lambda b, i: (0, 0)),      # [Wk|Wv]
                pl.BlockSpec((1, 2 * E), lambda b, i: (0, 0)),      # [bk|bv]
            ],
            out_specs=[pl.BlockSpec((1, tm, E), lambda b, i: (b, i, 0))
                       for _ in range(2)],
        ),
        compiler_params=pltpu.CompilerParams(
            dimension_semantics=("parallel", "parallel"),
            vmem_limit_bytes=vmem_limit),
    )(x_bf, wkv, bkv)

    # ---- kernel 2: fused Q proj + flash attention + output projection --------
    tq = _pick_tile(N, block_q)
    # v7x has 2 TensorCores; if B == 1 make sure the query axis has extent >= 2
    # so the parallel grid axes can be sharded across both cores.
    if B == 1 and tq == N and N >= 16 and (N // 2) % 8 == 0:
        tq = N // 2
    tk = _pick_tile(N, block_k)

    out = pl.pallas_call(
        functools.partial(_flash_attn_kernel, num_heads=H, exp_dtype=exp_dtype),
        out_shape=jax.ShapeDtypeStruct((B, N, E), x.dtype),
        grid_spec=pltpu.PrefetchScalarGridSpec(
            num_scalar_prefetch=0,
            grid=(B, N // tq, N // tk),          # KV reduction axis last
            in_specs=[
                pl.BlockSpec((1, tq, E), lambda b, qi, ki: (b, qi, 0)),  # x
                pl.BlockSpec((1, tk, E), lambda b, qi, ki: (b, ki, 0)),  # k
                pl.BlockSpec((1, tk, E), lambda b, qi, ki: (b, ki, 0)),  # v
                pl.BlockSpec((E, E), lambda b, qi, ki: (0, 0)),          # wq
                pl.BlockSpec((1, E), lambda b, qi, ki: (0, 0)),          # bq
                pl.BlockSpec((E, E), lambda b, qi, ki: (0, 0)),          # wo
                pl.BlockSpec((1, E), lambda b, qi, ki: (0, 0)),          # bo
            ],
            out_specs=pl.BlockSpec((1, tq, E), lambda b, qi, ki: (b, qi, 0)),
            scratch_shapes=[
                pltpu.VMEM((tq, E), compute_dtype),    # q tile (pre-scaled)
                pltpu.VMEM((H, tq, 1), jnp.float32),   # running max  m
                pltpu.VMEM((H, tq, 1), jnp.float32),   # running sum  l
                pltpu.VMEM((tq, E), jnp.float32),      # fp32 output accumulator
            ],
        ),
        compiler_params=pltpu.CompilerParams(
            dimension_semantics=("parallel", "parallel", "arbitrary"),
            vmem_limit_bytes=vmem_limit),
    )(x_bf, k, v, wq, bq, wo, bo)
    return out


# --------------------------------------------------------------------------- test
def init_params(key, emb_size):
    """Deterministic synthetic parameters (Linear weights stored as (in, out))."""
    keys = jax.random.split(key, 8)
    bound = 1.0 / math.sqrt(emb_size)

    def lin(kw, kb):
        w = jax.random.uniform(kw, (emb_size, emb_size), jnp.float32, -bound, bound)
        b = jax.random.uniform(kb, (1, emb_size), jnp.float32, -bound, bound)
        return w, b

    wq, bq = lin(keys[0], keys[1])
    wk, bk = lin(keys[2], keys[3])
    wv, bv = lin(keys[4], keys[5])
    wo, bo = lin(keys[6], keys[7])
    return dict(wq=wq, bq=bq, wk=wk, bk=bk, wv=wv, bv=bv, wo=wo, bo=bo)


def reference_mha(x, params, num_heads):
    """Pure-JAX fp32 reference matching the PyTorch forward (mask=None, eval mode)."""
    B, N, E = x.shape
    H = num_heads
    D = E // H

    def proj(w, b):
        return x @ w + b[0]

    q = proj(params["wq"], params["bq"]).reshape(B, N, H, D).transpose(0, 2, 1, 3)
    k = proj(params["wk"], params["bk"]).reshape(B, N, H, D).transpose(0, 2, 1, 3)
    v = proj(params["wv"], params["bv"]).reshape(B, N, H, D).transpose(0, 2, 1, 3)
    energy = jnp.einsum('bhqd,bhkd->bhqk', q, k)
    att = jax.nn.softmax(energy / (E ** 0.5), axis=-1)
    out = jnp.einsum('bhqk,bhkd->bhqd', att, v)
    out = out.transpose(0, 2, 1, 3).reshape(B, N, E)
    return out @ params["wo"] + params["bo"][0]


if __name__ == "__main__":
    B, N, E, H = 2, 8, 32, 4   # batch, seq, emb_size, num_heads (dropout=0 / eval)

    key = jax.random.PRNGKey(0)
    k_x, k_p = jax.random.split(key)
    x = jax.random.normal(k_x, (B, N, E), dtype=jnp.float32)
    params = init_params(k_p, E)

    out = multi_head_attention(x, params, num_heads=H)
    out = jax.block_until_ready(out)

    ref = reference_mha(x, params, num_heads=H)
    assert out.shape == (B, N, E)
    # bf16 MXU operands (fp32 accumulation) -> compare with bf16-appropriate tolerance.
    assert jnp.allclose(out, ref, atol=5e-2, rtol=5e-2), "mismatch vs reference"

    print("KERNEL_OK")
</pallas_src>

<mosaic_0001>
module attributes {stable_mosaic.version = 11 : i64} {
  func.func @_kv_proj_kernel(%arg0: i32, %arg1: i32, %arg2: memref<1x8x32xbf16, #tpu.memory_space<vmem>>, %arg3: memref<32x64xbf16, #tpu.memory_space<vmem>>, %arg4: memref<1x64xf32, #tpu.memory_space<vmem>>, %arg5: memref<1x8x32xbf16, #tpu.memory_space<vmem>>, %arg6: memref<1x8x32xbf16, #tpu.memory_space<vmem>>) attributes {dimension_semantics = [#tpu.dimension_semantics<parallel>, #tpu.dimension_semantics<parallel>], iteration_bounds = array<i64: 2, 1>, scalar_prefetch = 0 : i64, scratch_operands = 0 : i64, tpu.core_type = #tpu.core_type<tc>, window_params = [{transform_indices = @transform_0, window_bounds = array<i64: 1, 8, 32>}, {pipeline_mode = #tpu.pipeline_mode<synchronous>, transform_indices = @transform_1, window_bounds = array<i64: 32, 64>}, {pipeline_mode = #tpu.pipeline_mode<synchronous>, transform_indices = @transform_2, window_bounds = array<i64: 1, 64>}, {transform_indices = @transform_3, window_bounds = array<i64: 1, 8, 32>}, {transform_indices = @transform_4, window_bounds = array<i64: 1, 8, 32>}]} {
    %c0 = arith.constant 0 : index
    %c0_0 = arith.constant 0 : index
    %c0_1 = arith.constant 0 : index
    %0 = vector.load %arg2[%c0, %c0_0, %c0_1] : memref<1x8x32xbf16, #tpu.memory_space<vmem>>, vector<1x8x32xbf16>
    %1 = vector.shape_cast %0 : vector<1x8x32xbf16> to vector<8x32xbf16>
    %c0_2 = arith.constant 0 : index
    %c0_3 = arith.constant 0 : index
    %2 = vector.load %arg3[%c0_2, %c0_3] : memref<32x64xbf16, #tpu.memory_space<vmem>>, vector<32x64xbf16>
    %cst = arith.constant dense<0.000000e+00> : vector<8x64xf32>
    %3 = tpu.matmul %1, %2, %cst {dimension_numbers = #tpu.dot_dimension_numbers<[1], [0], [0], [1], [0, 0, 1, 1], [], []>} : vector<8x32xbf16>, vector<32x64xbf16>, vector<8x64xf32> -> vector<8x64xf32>
    %c0_4 = arith.constant 0 : index
    %c0_5 = arith.constant 0 : index
    %4 = vector.load %arg4[%c0_4, %c0_5] : memref<1x64xf32, #tpu.memory_space<vmem>>, vector<1x64xf32>
    %5 = vector.shape_cast %4 : vector<1x64xf32> to vector<64xf32>
    %6 = vector.shape_cast %5 : vector<64xf32> to vector<1x64xf32>
    %7 = vector.broadcast %6 : vector<1x64xf32> to vector<8x64xf32>
    %8 = arith.addf %3, %7 : vector<8x64xf32>
    %9 = vector.extract_strided_slice %8 {offsets = [0, 0], sizes = [8, 32], strides = [1, 1]} : vector<8x64xf32> to vector<8x32xf32>
    %10 = arith.truncf %9 : vector<8x32xf32> to vector<8x32xbf16>
    %c0_6 = arith.constant 0 : index
    %c0_7 = arith.constant 0 : index
    %c0_8 = arith.constant 0 : index
    %11 = vector.load %arg5[%c0_6, %c0_7, %c0_8] : memref<1x8x32xbf16, #tpu.memory_space<vmem>>, vector<1x8x32xbf16>
    %12 = vector.shape_cast %11 : vector<1x8x32xbf16> to vector<8x32xbf16>
    %13 = vector.shape_cast %10 : vector<8x32xbf16> to vector<1x8x32xbf16>
    tpu.vector_store %arg5[%c0_6, %c0_7, %c0_8], %13 {strides = array<i32>} : memref<1x8x32xbf16, #tpu.memory_space<vmem>>, vector<1x8x32xbf16>,
    %14 = vector.extract_strided_slice %8 {offsets = [0, 32], sizes = [8, 32], strides = [1, 1]} : vector<8x64xf32> to vector<8x32xf32>
    %15 = arith.truncf %14 : vector<8x32xf32> to vector<8x32xbf16>
    %c0_9 = arith.constant 0 : index
    %c0_10 = arith.constant 0 : index
    %c0_11 = arith.constant 0 : index
    %16 = vector.load %arg6[%c0_9, %c0_10, %c0_11] : memref<1x8x32xbf16, #tpu.memory_space<vmem>>, vector<1x8x32xbf16>
    %17 = vector.shape_cast %16 : vector<1x8x32xbf16> to vector<8x32xbf16>
    %18 = vector.shape_cast %15 : vector<8x32xbf16> to vector<1x8x32xbf16>
    tpu.vector_store %arg6[%c0_9, %c0_10, %c0_11], %18 {strides = array<i32>} : memref<1x8x32xbf16, #tpu.memory_space<vmem>>, vector<1x8x32xbf16>,
    return
  }
  func.func @transform_0(%arg0: i32, %arg1: i32) -> (i32, i32, i32) {
    %c0_i32 = arith.constant 0 : i32
    %c0_i32_0 = arith.constant 0 : i32
    return %arg0, %arg1, %c0_i32 : i32, i32, i32
  }
  func.func @transform_1(%arg0: i32, %arg1: i32) -> (i32, i32) {
    %c0_i32 = arith.constant 0 : i32
    %c0_i32_0 = arith.constant 0 : i32
    %c0_i32_1 = arith.constant 0 : i32
    return %c0_i32, %c0_i32_0 : i32, i32
  }
  func.func @transform_2(%arg0: i32, %arg1: i32) -> (i32, i32) {
    %c0_i32 = arith.constant 0 : i32
    %c0_i32_0 = arith.constant 0 : i32
    %c0_i32_1 = arith.constant 0 : i32
    return %c0_i32, %c0_i32_0 : i32, i32
  }
  func.func @transform_3(%arg0: i32, %arg1: i32) -> (i32, i32, i32) {
    %c0_i32 = arith.constant 0 : i32
    %c0_i32_0 = arith.constant 0 : i32
    return %arg0, %arg1, %c0_i32 : i32, i32, i32
  }
  func.func @transform_4(%arg0: i32, %arg1: i32) -> (i32, i32, i32) {
    %c0_i32 = arith.constant 0 : i32
    %c0_i32_0 = arith.constant 0 : i32
    return %arg0, %arg1, %c0_i32 : i32, i32, i32
  }
}

</mosaic_0001>

<bundles_post_ra>
// kernel: tpu_custom_call.1
= control target key start
LH: loop header
LB: loop body
LE: loop exit
PB: predicated region body
PF: predicated region fallthrough
CT: control target
= control target key end

     0   :  { %10 = vsyncpa [#allocation3], 0  ;;  %s1083_s0 = inlined_call_operand.hbm [shape: bf16[2,8,32], index: 0, kind: input, shape index: {}]   ;;  %s1084_s1 = inlined_call_operand.hbm [shape: bf16[32,64], index: 1, kind: input, shape index: {}]   ;;  %s1085_s2 = inlined_call_operand.vmem [shape: f32[1,64], index: 2, kind: input, shape index: {}]   ;;  %s1086_s3 = inlined_call_operand.hbm [shape: bf16[2,8,32], index: 3, kind: output, shape index: {0}]   ;;  %s1087_s4 = inlined_call_operand.hbm [shape: bf16[2,8,32], index: 4, kind: output, shape index: {1}]  }
   0x1   :  { %12 = vsyncpa [#allocation3 + $0x1], 0 }
   0x2   :  { %13 = vsyncpa [#allocation6], 0 }
   0x3   :  { %14 = vsyncpa [#allocation4], 0 }
   0x4   :  { %16 = vsyncpa [#allocation4 + $0x1], 0 }
   0x5   :  { %17 = vsyncpa [#allocation9], 0 }
   0x6   :  { %19 = vsyncpa [#allocation9 + $0x1], 0  ;;  %s826_s15 = smov 0   ;;  %s828_s16 = smov 0  }
   0x7   :  { %s830_s17 = smov 0   ;;  %s832_s18 = smov 0  }
   0x8   :  { %s834_s19 = smov 0   ;;  %s836_s20 = smov 0  }
   0x9 LB: > { %s494_s21 = sadd.s32 4294967295, %s790_s20   ;;  %s495_s22 = sadd.s32 4294967294, %s790_s20   ;;  %s790_s20 = sphi %s836_s20, %s25_s20   ;;  %s786_s19 = sphi %s834_s19, %s1111_s19   ;;  %s782_s18 = sphi %s832_s18, %s1110_s18   ;;  %s778_s17 = sphi %s830_s17, %s1109_s17   ;;  %s774_s16 = sphi %s828_s16, %s1108_s16   ;;  %s770_s15 = sphi %s826_s15, %s1107_s15  }
   0xa   : > { %p59_p0 = scmp.ne.s32.totalorder %s774_s16, %s770_s15  ;;  %p860_p1 = scmp.eq.s32.totalorder %s494_s21, 0 }
   0xb   : > { %p864_p2 = scmp.eq.s32.totalorder %s494_s21, 1  ;;  %p133_p3 = scmp.eq.s32.totalorder %s495_s22, 1 }
   0xc   : > { %s1092_s23 = scalar_select %p860_p1, 1, 0 }
   0xd   : > { %s1093_s24 = scalar_select %p864_p2, 1, 0 }
   0xe   : > { %p870_p4 = por %p860_p1, %p59_p0  ;;  %p496_p5 = scmp.ge.s32.totalorder %s790_s20, 1 }
   0xf   : > { %p875_p6 = por %p133_p3, %p59_p0  ;;  %p168_p7 = scmp.lt.s32.totalorder %s790_s20, 3 }
  0x10   : > { %s1094_s25 = scalar_select %p870_p4, 1, 0 }
  0x11   : > { %s1095_s26 = scalar_select %p875_p6, 1, 0 }
  0x12   : > { %p880_p8 = pnand %p496_p5, %p168_p7  ;;  %s792_s28 = smov [#allocation5]  }
  0x13   : > { %s180_s29 = sshll.u32 %s792_s28, 4  ;;  %s37_s5 = sadd.s32 1, %s786_s19  ;;  %s181_s29 = int_to_ptr.vmem [resolvable:$true] %s180_s29 }
  0x14   : > { %s1096_s27 = scalar_select %p880_p8, 1, 0 }
  0x15   : > { %p539_p9 = pneg %p880_p8  ;;  %s614_s8 = scalar_lea.hbm %s1084_s1, 256 }
  0x16   : > { %p615_p12 = scmp.ne.s32.totalorder %s1084_s1, %s614_s8  ;;  %p621_p5 = scmp.lt.u32.totalorder %s614_s8, %s1084_s1 }
  0x17   : > { %p889_p11 = pnand %p539_p9, %p860_p1 }
  0x19   : > { %p616_p13 = pneg %p889_p11 }
  0x1b   : > { %p617_p0 = pnand %p616_p13, %p615_p12 }
  0x1d   : > { %p618_p3 = pneg %p617_p0 }
  0x1f   : > { %p623_p7 = pnand %p621_p5, %p618_p3 }
  0x21   : > { %626 = shalt.err (!%p623_p7)
}
  0x22   : > { %s627_s13 = scalar_lea.vmem %s181_s29, 256  ;;  %p635_p1 = scmp.lt.s32.totalorder %s181_s29, %s181_s29 }
  0x23   : > { %p628_p9 = scmp.ne.s32.totalorder %s181_s29, %s627_s13  ;;  %p636_p4 = scmp.lt.s32.totalorder %s627_s13, %s627_s13 }
  0x25   : > { %p630_p10 = pnand %p628_p9, %p616_p13  ;;  %p637_p8 = por %p636_p4, %p635_p1 }
  0x27   : > { %p631_p6 = pneg %p630_p10 }
  0x29   : > { %p638_p2 = pnand %p637_p8, %p631_p6 }
  0x2b   : > { %641 = shalt.err (!%p638_p2)
}
  0x2c   : > { %s793_s14 = smov 64   ;;  %s794_s21 = smov 4  }
  0x2d   : > { %542 = dma.hbm_to_vmem [thread:$0]  (!%p889_p11), %s1084_s1, 256, %s181_s29, [#allocation6], %s793_s14, %s793_s14, %s794_s21  }
  0x2e   : > { %p39_p1 = scmp.ge.s32.totalorder %s37_s5, 2  ;;  %s46_s6 = sadd.s32 1, %s778_s17 }
  0x2f   : > { %p53_p2 = scmp.ne.s32.totalorder %s778_s17, %s774_s16  ;;  %p54_p4 = scmp.eq.s32.totalorder %s790_s20, 0 }
  0x30   : > { %s1113_s5 = smov (%p39_p1, %s37_s5), 0  ;;  %p1099_p8 = scmp.ne.s32.totalorder %s1093_s24, 0 }
  0x31   : > { %p916_p6 = por %p54_p4, %p53_p2  ;;  %s41_s30 = ssub.s32 %s786_s19, %s1113_s5 }
  0x32   : > { %p922_p10 = por %p1099_p8, %p53_p2  ;;  %p555_p12 = scmp.lt.s32.totalorder %s790_s20, 2 }
  0x33   : > { %p44_p11 = scmp.eq.s32.totalorder %s41_s30, 0  ;;  %s197_s29 = sand.u32 1, %s778_s17  }
  0x34   : > { %s499_s9 = sshll.u32 %s197_s29, 2  ;;  %s500_s11 = sshll.u32 %s786_s19, 6 }
  0x35   : > { %s931_s10 = scalar_select %p44_p11, %s778_s17, %s46_s6  }
  0x36   : > { %s937_s14 = scalar_lea.hbm %s1083_s0, %s500_s11  ;;  %s201_s24 = scalar_lea.vmem [#allocation2], %s499_s9 }
  0x37   : > { %s209_s21 = sshll.u32 %s201_s24, 4  ;;  %p943_p13 = pnand %p555_p12, %p916_p6  ;;  %s939_s21 = int_to_ptr.vmem [resolvable:$true] %s209_s21 }
  0x38   : > { %s198_s28 = scalar_lea.sflag [#allocation3], %s197_s29  ;;  %s642_s6 = scalar_lea.hbm %s937_s14, 64 }
  0x39   : > { %p643_p0 = scmp.ne.s32.totalorder %s937_s14, %s642_s6  ;;  %p644_p3 = pneg %p943_p13 }
  0x3a   : > { %s647_s11 = scalar_lea.hbm %s1083_s0, 128  ;;  %p648_p9 = scmp.lt.u32.totalorder %s937_s14, %s1083_s0 }
  0x3b   : > { %p645_p5 = pnand %p644_p3, %p643_p0  ;;  %p649_p1 = scmp.lt.u32.totalorder %s647_s11, %s642_s6 }
  0x3c   : > { %p651_p4 = scmp.lt.u32.totalorder %s642_s6, %s937_s14 }
  0x3d   : > { %p646_p7 = pneg %p645_p5  ;;  %p650_p2 = por %p649_p1, %p648_p9 }
  0x3f   : > { %p652_p6 = por %p651_p4, %p650_p2 }
  0x41   : > { %p653_p8 = pnand %p652_p6, %p646_p7 }
  0x43   : > { %656 = shalt.err (!%p653_p8)
}
  0x44   : > { %s657_s29 = scalar_lea.vmem %s939_s21, 64  ;;  %s795_s13 = smov [#allocation2]  }
  0x45   : > { %p658_p12 = scmp.ne.s32.totalorder %s939_s21, %s657_s29  ;;  %s662_s24 = sshll.u32 %s795_s13, 4  ;;  %s663_s24 = int_to_ptr.vmem [resolvable:$false] %s662_s24 }
  0x46   : > { %s664_s30 = scalar_lea.vmem %s663_s24, 128  ;;  %p665_p5 = scmp.lt.s32.totalorder %s939_s21, %s663_s24 }
  0x47   : > { %p660_p11 = pnand %p658_p12, %p644_p3  ;;  %p666_p9 = scmp.lt.s32.totalorder %s664_s30, %s657_s29 }
  0x49   : > { %p661_p0 = pneg %p660_p11  ;;  %p667_p1 = por %p666_p9, %p665_p5 }
  0x4b   : > { %p668_p2 = pnand %p667_p1, %p661_p0 }
  0x4d   : > { %671 = shalt.err (!%p668_p2)
}
  0x4e   : > { %546 = dma.hbm_to_vmem [thread:$0]  (!%p943_p13), %s937_s14, 64, %s939_s21, %s198_s28  }
  0x4f   : > { %p1102_p7 = scmp.ne.s32.totalorder %s1096_s27, 0 }
  0x50   : > { %s975_s6 = sand.u32 (!%p1102_p7), 1, %s774_s16   ;;  %p1103_p3 = scmp.ne.s32.totalorder (!%p1102_p7), %s1094_s25, 0 }
  0x51   : > { %218 = sbr.rel (%p1102_p7) target bundleno = 446 (0x1be), region = 32  ;;  %s978_s9 = sshll.u32 (!%p1102_p7), %s975_s6, 2 }
  0x52   : > { %s221_s11 = scalar_lea.sflag (!%p1102_p7), [#allocation3], %s975_s6  ;;  %s224_s7 = scalar_lea.vmem (!%p1102_p7), [#allocation2], %s978_s9 }
  0x58   : > { %753 = dma.done.wait (%p1103_p3), %s221_s11, 64  }
  0x59   : > { %755 = vsyncadd (%p1103_p3), %s221_s11, 4294967232  ;;  %p1104_p13 = scmp.ne.s32.totalorder %s1092_s23, 0 }
  0x5b   : > { %757 = dma.done.wait (%p1104_p13), [#allocation6], 256  }
  0x5c   : > { %759 = vsyncadd (%p1104_p13), [#allocation6], 4294967040  ;;  %v796_v0 = vmov 0.0   ;;  %vm797_vm0 = vmmov 0   ;;  %v612_v1 = vld [vmem:[#allocation5] sm:$0xff]   ;;  %v613_v2 = vld [vmem:[#allocation5 + $0x8] sm:$0xff]  }
  0x5d   : > { %521 = vmatprep.subr.bf16.mxu0 %v796_v0  ;;  %525 = vmatprep.mubr.msk.bf16.mxu0 %vm797_vm0, %v796_v0  ;;  %v259_v3 = vld [vmem:[%s224_s7] sm:$0xf]  ;;  %vm283_vm1 = vcmask 261120   ;;  %s513_s23 = sshll.u32 %s782_s18, 6  ;;  %s250_s14 = scalar_lea.vmem [#allocation7], %s978_s9  ;;  %vm328_vm2 = vcmask 257024  }
  0x5e   : > { %522 = vmatpush3.bf16.msra.mxu0 %v612_v1  ;;  %v506_v4 = vld [vmem:[%s1085_s2] ss:$0 sm:$0xff]  ;;  %s357_s21 = sshll.u32 %s250_s14, 4  ;;  %s1000_s12 = scalar_lea.hbm %s1086_s3, %s513_s23  ;;  %s1002_s21 = int_to_ptr.vmem [resolvable:$true] %s357_s21 }
  0x5f   : > { %523 = vmatprep.subr.bf16.mxu0 %v796_v0  ;;  %s798_s29 = smov 96   ;;  %s338_s13 = scalar_lea.sflag [#allocation4], %s975_s6 }
  0x60   : > { %s672_s24 = scalar_lea.vmem %s1002_s21, 64  ;;  %s799_s30 = smov [#allocation7]  }
  0x61   : > { %p673_p4 = scmp.ne.s32.totalorder %s1002_s21, %s672_s24  ;;  %s676_s11 = sshll.u32 %s799_s30, 4  ;;  %s677_s11 = int_to_ptr.vmem [resolvable:$false] %s676_s11 }
  0x62   : > { %524 = vmatpush3.bf16.msra.mxu0 %v613_v2  ;;  %s678_s7 = scalar_lea.vmem %s677_s11, 128  ;;  %p679_p12 = scmp.lt.s32.totalorder %s1002_s21, %s677_s11 }
  0x63   : > { %p674_p6 = pnand %p673_p4, %p922_p10  ;;  %p680_p11 = scmp.lt.s32.totalorder %s678_s7, %s672_s24 }
  0x65   : > { %526 = vmatmul.mubr.msk.bf16.vlgmr.msra.gmra.mrb[0].mxu0 %vm283_vm1, %v259_v3  ;;  %p675_p8 = pneg %p674_p6  ;;  %p681_p0 = por %p680_p11, %p679_p12 }
  0x67   : > { %p682_p5 = pnand %p681_p0, %p675_p8 }
 0x138   : > { %v321_v5 = vpop.f32.mrb[0].mxu0 }
 0x139   : > { %v322_v6 = vadd.f32 %v506_v4, %v321_v5  ;;  %v527_v7 = vpop.f32.mrb[1].mxu0 }
 0x13a   : > { %v324_v8 = vpop.f32.mrb[2].mxu0 }
 0x13b   : > { %v327_v9 = vpack.c.bf16 %v322_v6, %v322_v6  ;;  %v528_v10 = vpop.f32.mrb[3].mxu0 }
 0x13d   : > { %333 = vrot.lane.b32.xlu0 %v327_v9, %s798_s29  ;;  %329 = vst.msk [vmem:[%s250_s14] sm:$0xf] %vm328_vm2, %v327_v9 }
 0x13e   : > { %685 = shalt.err (!%p682_p5)
}
 0x13f   : > { %s686_s25 = scalar_lea.hbm %s1000_s12, 64  ;;  %s690_s22 = scalar_lea.hbm %s1086_s3, 128 }
 0x140   : > { %p687_p9 = scmp.ne.s32.totalorder %s1000_s12, %s686_s25  ;;  %p691_p7 = scmp.lt.u32.totalorder %s1000_s12, %s1086_s3 }
 0x141   : > { %p692_p3 = scmp.lt.u32.totalorder %s690_s22, %s686_s25  ;;  %p694_p4 = scmp.lt.u32.totalorder %s686_s25, %s1000_s12 }
 0x142   : > { %p688_p1 = pnand %p687_p9, %p922_p10 }
 0x143   : > { %p693_p13 = por %p692_p3, %p691_p7 }
 0x144   : > { %p689_p2 = pneg %p688_p1 }
 0x145   : > { %p695_p6 = por %p694_p4, %p693_p13 }
 0x147   : > { %p696_p8 = pnand %p695_p6, %p689_p2 }
 0x149   : > { %699 = shalt.err (!%p696_p8)
}
 0x14a   : > { %535 = dma.vmem_to_hbm [thread:$0]  (%p922_p10), %s1002_s21, 64, %s1000_s12, %s338_s13  }
 0x14b   : > { %s257_s24 = scalar_lea.vmem [#allocation8], %s978_s9  ;;  %s1033_s27 = scalar_lea.hbm %s1087_s4, %s513_s23 }
 0x14c   : > { %s371_s30 = sshll.u32 %s257_s24, 4  ;;  %s343_s25 = scalar_lea.sflag [#allocation9], %s975_s6  ;;  %s1035_s30 = int_to_ptr.vmem [resolvable:$true] %s371_s30 }
 0x14d   : > { %s700_s14 = scalar_lea.vmem %s1035_s30, 64  ;;  %s800_s18 = smov [#allocation8]  }
 0x14e   : > { %p701_p12 = scmp.ne.s32.totalorder %s1035_s30, %s700_s14  ;;  %s704_s9 = sshll.u32 %s800_s18, 4  ;;  %s705_s9 = int_to_ptr.vmem [resolvable:$false] %s704_s9 }
 0x14f   : > { %s706_s21 = scalar_lea.vmem %s705_s9, 128  ;;  %p707_p5 = scmp.lt.s32.totalorder %s1035_s30, %s705_s9 }
 0x150   : > { %p702_p11 = pnand %p701_p12, %p922_p10  ;;  %p708_p9 = scmp.lt.s32.totalorder %s706_s21, %s700_s14 }
 0x152   : > { %p703_p0 = pneg %p702_p11  ;;  %p709_p1 = por %p708_p9, %p707_p5 }
 0x154   : > { %p710_p2 = pnand %p709_p1, %p703_p0 }
 0x1af   : > { %v334_v11 = vpop.permute.xlu0 %333 }
 0x1b0   : > { %336 = vst.msk [vmem:[%s257_s24] sm:$0xf] %vm328_vm2, %v334_v11 }
 0x1b1   : > { %713 = shalt.err (!%p710_p2)
}
 0x1b2   : > { %s714_s6 = scalar_lea.hbm %s1033_s27, 64  ;;  %s718_s13 = scalar_lea.hbm %s1087_s4, 128 }
 0x1b3   : > { %p715_p7 = scmp.ne.s32.totalorder %s1033_s27, %s714_s6  ;;  %p719_p4 = scmp.lt.u32.totalorder %s1033_s27, %s1087_s4 }
 0x1b4   : > { %p720_p6 = scmp.lt.u32.totalorder %s718_s13, %s714_s6  ;;  %p722_p12 = scmp.lt.u32.totalorder %s714_s6, %s1033_s27 }
 0x1b5   : > { %p716_p3 = pnand %p715_p7, %p922_p10 }
 0x1b6   : > { %p721_p8 = por %p720_p6, %p719_p4 }
 0x1b7   : > { %p717_p13 = pneg %p716_p3 }
 0x1b8   : > { %p723_p11 = por %p722_p12, %p721_p8 }
 0x1ba   : > { %p724_p0 = pnand %p723_p11, %p717_p13 }
 0x1bc   : > { %727 = shalt.err (!%p724_p0)
}
 0x1bd   : > { %536 = dma.vmem_to_hbm [thread:$0]  (%p922_p10), %s1035_s30, 64, %s1033_s27, %s343_s25  }
 0x1be PF: > { %s383_s29 = sand.u32 1, %s770_s15   ;;  %p1105_p5 = scmp.ne.s32.totalorder %s1095_s26, 0 }
 0x1bf   : > { %p1106_p9 = scmp.ge.s32.totalorder %s790_s20, 2  ;;  %s384_s24 = scalar_lea.sflag [#allocation4], %s383_s29 }
 0x1c1   : > { %p548_p1 = pnand %p1106_p9, %p1105_p5 }
 0x1c3   : > { %761 = dma.done.wait (!%p548_p1), %s384_s24, 64  }
 0x1c4   : > { %763 = vsyncadd (!%p548_p1), %s384_s24, 4294967232  ;;  %s393_s11 = scalar_lea.sflag [#allocation9], %s383_s29 }
 0x1c5   : > { %765 = dma.done.wait (!%p548_p1), %s393_s11, 64  }
 0x1c6   : > { %767 = vsyncadd (!%p548_p1), %s393_s11, 4294967232  ;;  %s25_s20 = sadd.s32 1, %s790_s20   ;;  %s1107_s15 = smov %s774_s16 }
 0x1c7   : > { %p22_p2 = scmp.ge.s32.totalorder %s25_s20, 4   ;;  %s1108_s16 = smov %s778_s17 }
 0x1c8   : > { %s1109_s17 = smov %s931_s10  ;;  %s1110_s18 = smov %s786_s19 }
 0x1c9   : > { %s1111_s19 = smov %s1113_s5  ;;  %24 = sbr.rel (!%p22_p2) target bundleno = 9 (0x9), region = 98 }
 0x1d0   :  { %398 = vsyncpa [#allocation3], 1 }
 0x1d1   :  { %400 = vsyncpa [#allocation3 + $0x1], 1 }
 0x1d2   :  { %401 = vsyncpa [#allocation6], 1 }
 0x1d3   :  { %402 = vsyncpa [#allocation4], 1 }
 0x1d4   :  { %404 = vsyncpa [#allocation4 + $0x1], 1 }
 0x1d5   :  { %405 = vsyncpa [#allocation9], 1 }
 0x1d6   :  { %407 = vsyncpa [#allocation9 + $0x1], 1 }

</bundles_post_ra>
